<compile_context>
chip_gen: v5e
topology: v5e:2x2
jax: 0.10.0
libtpu: 0.0.40
codegen_flags: <defaults>
</compile_context>

<pallas_src>
import jax
import jax.numpy as jnp
from jax.experimental import pallas as pl
from jax.experimental.pallas import tpu as pltpu


def _normalize_kernel(scale_ref, bias_ref, x_ref, o_ref):
    # scale_ref / bias_ref: VMEM (br, 1) f32; x_ref: (br, bc) in-dtype;
    # o_ref: (br, bc) out-dtype.
    # (x/255 - mean)/std  ==  x * scale + bias   (one mul + one add per elem)
    x = x_ref[...].astype(jnp.float32)
    o_ref[...] = (x * scale_ref[...] + bias_ref[...]).astype(o_ref.dtype)


def _min_row_tile(dtype):
    """Minimum sublane tile (second-minor dim) for a dtype: f32->8, bf16->16, u8->32."""
    return {4: 8, 2: 16, 1: 32}.get(jnp.dtype(dtype).itemsize, 8)


def _choose_blocks(R, L, in_itemsize, out_itemsize, row_tile,
                   target_bytes=2 << 20, min_grid_blocks=4):
    """Pick (br, bc) for the flattened (R, L) view.

    `target_bytes` bounds the bytes of ONE (br, bc) block counting both the
    input tile and the output tile, so the double-buffered VMEM footprint is
    ~2*target_bytes (+ tiny scale/bias).  Block dims are multiples of
    (row_tile, 128) or equal the full dim; ragged tails are left to Pallas
    masking via cdiv grids.
    """
    bpe = in_itemsize + out_itemsize  # bytes per element for x + out

    # Column block: size it so a (row_tile, bc) block is ~target_bytes.
    if L <= 512:
        bc = L                                            # full dim, small planes
    else:
        bc_cap = max(128, (target_bytes // (row_tile * bpe)) // 128 * 128)
        bc = min(bc_cap, (L // 128) * 128)                # 128-multiple, <= L

    # Row block: as many row-tiles as still fit the budget for this bc.
    rows_fit = max(row_tile, (target_bytes // (bc * bpe)) // row_tile * row_tile)
    br = R if (R <= rows_fit or R < row_tile) else rows_fit

    # Megacore (v7x has 2 TCs): make sure mid/large inputs produce several
    # grid blocks along the "parallel" axes; tiny inputs keep grid=(1,1)
    # (per-step overhead would dominate).
    if R * L * bpe >= (4 << 20):
        while pl.cdiv(R, br) * pl.cdiv(L, bc) < min_grid_blocks:
            new_bc = max(128, (bc // 2) // 128 * 128)
            if new_bc < bc:
                bc = new_bc
                continue
            new_br = max(row_tile, (br // 2) // row_tile * row_tile)
            if new_br < br:
                br = new_br
                continue
            break

    return br, bc


def normalize(x, mean, std, out_dtype=None, target_bytes=2 << 20):
    """x: [N, C, H, W] (NCHW), float32/bfloat16 or uint8; mean/std: f32[C].

    Returns (x/255 - mean)/std with per-channel mean/std, in `out_dtype`
    (default: x.dtype if floating, else float32).
    """
    N, C, H, W = x.shape
    assert mean.shape == (C,) and std.shape == (C,)

    if out_dtype is None:
        out_dtype = x.dtype if jnp.issubdtype(x.dtype, jnp.floating) else jnp.float32
    out_dtype = jnp.dtype(out_dtype)

    R, L = N * C, H * W
    x2 = x.reshape(R, L)                      # free: NCHW planes are contiguous

    # Fold normalization into per-channel scale/bias, replicated per row.
    mean32 = mean.astype(jnp.float32)
    std32 = std.astype(jnp.float32)
    scale_rows = jnp.tile(1.0 / (255.0 * std32), N)[:, None]   # (R, 1) f32
    bias_rows = jnp.tile(-mean32 / std32, N)[:, None]          # (R, 1) f32

    in_item = jnp.dtype(x.dtype).itemsize
    out_item = out_dtype.itemsize
    row_tile = max(_min_row_tile(x.dtype), _min_row_tile(out_dtype))

    br, bc = _choose_blocks(R, L, in_item, out_item, row_tile, target_bytes)
    grid = (pl.cdiv(R, br), pl.cdiv(L, bc))

    out2 = pl.pallas_call(
        _normalize_kernel,
        out_shape=jax.ShapeDtypeStruct((R, L), out_dtype),
        grid=grid,
        in_specs=[
            pl.BlockSpec((br, 1), lambda i, j: (i, 0)),   # scale (per-row)
            pl.BlockSpec((br, 1), lambda i, j: (i, 0)),   # bias  (per-row)
            pl.BlockSpec((br, bc), lambda i, j: (i, j)),  # x
        ],
        out_specs=pl.BlockSpec((br, bc), lambda i, j: (i, j)),
        compiler_params=pltpu.CompilerParams(
            dimension_semantics=("parallel", "parallel"),
            vmem_limit_bytes=32 << 20),
    )(scale_rows, bias_rows, x2)

    return out2.reshape(N, C, H, W)


if __name__ == "__main__":
    key = jax.random.PRNGKey(0)
    kf, ku = jax.random.split(key)

    # Standard ImageNet buffers (the module registers whatever 3-element
    # mean/std it is constructed with).
    mean = jnp.array([0.485, 0.456, 0.406], dtype=jnp.float32)
    std = jnp.array([0.229, 0.224, 0.225], dtype=jnp.float32)

    N, C, H, W = 2, 3, 16, 16

    # --- f32 input (matches the PyTorch forward exactly) ---
    x_f32 = jax.random.uniform(kf, (N, C, H, W), dtype=jnp.float32,
                               minval=0.0, maxval=255.0)
    out = jax.block_until_ready(normalize(x_f32, mean, std))
    ref = (x_f32 / 255.0 - mean.reshape(1, 3, 1, 1)) / std.reshape(1, 3, 1, 1)
    assert out.shape == ref.shape and out.dtype == ref.dtype
    # Fused mul+add form differs from the divide form by a few ULPs.
    assert jnp.allclose(out, ref, atol=1e-5, rtol=1e-5)

    # --- uint8 input (4x less HBM read traffic; cast happens in-kernel) ---
    x_u8 = jax.random.randint(ku, (N, C, H, W), 0, 256,
                              dtype=jnp.int32).astype(jnp.uint8)
    out_u8 = jax.block_until_ready(normalize(x_u8, mean, std))
    ref_u8 = (x_u8.astype(jnp.float32) / 255.0
              - mean.reshape(1, 3, 1, 1)) / std.reshape(1, 3, 1, 1)
    assert out_u8.dtype == jnp.float32
    assert jnp.allclose(out_u8, ref_u8, atol=1e-5, rtol=1e-5)

    # --- bf16 output (halves write traffic when the consumer wants bf16) ---
    out_bf16 = jax.block_until_ready(
        normalize(x_f32, mean, std, out_dtype=jnp.bfloat16))
    assert out_bf16.dtype == jnp.bfloat16
    assert jnp.allclose(out_bf16.astype(jnp.float32), ref, atol=2e-2, rtol=2e-2)

    # --- static sanity check of block sizing for a realistic high-res image
    #     (no kernel launch): ~2 MiB per x+out block, multiple grid blocks.
    br_, bc_ = _choose_blocks(8 * 3, 3000 * 3000, 4, 4, 8)
    assert br_ * bc_ * 8 <= (2 << 20)
    assert pl.cdiv(8 * 3, br_) * pl.cdiv(3000 * 3000, bc_) >= 4

    print("KERNEL_OK")
</pallas_src>

<mosaic_0001>
module attributes {stable_mosaic.version = 11 : i64} {
  func.func @_normalize_kernel(%arg0: i32, %arg1: i32, %arg2: memref<6x1xf32, #tpu.memory_space<vmem>>, %arg3: memref<6x1xf32, #tpu.memory_space<vmem>>, %arg4: memref<6x256xf32, #tpu.memory_space<vmem>>, %arg5: memref<6x256xf32, #tpu.memory_space<vmem>>) attributes {dimension_semantics = [#tpu.dimension_semantics<parallel>, #tpu.dimension_semantics<parallel>], iteration_bounds = array<i64: 1, 1>, scalar_prefetch = 0 : i64, scratch_operands = 0 : i64, tpu.core_type = #tpu.core_type<tc>, window_params = [{transform_indices = @transform_0, window_bounds = array<i64: 6, 1>}, {transform_indices = @transform_1, window_bounds = array<i64: 6, 1>}, {transform_indices = @transform_2, window_bounds = array<i64: 6, 256>}, {transform_indices = @transform_3, window_bounds = array<i64: 6, 256>}]} {
    %c0 = arith.constant 0 : index
    %c0_0 = arith.constant 0 : index
    %0 = vector.load %arg4[%c0, %c0_0] : memref<6x256xf32, #tpu.memory_space<vmem>>, vector<6x256xf32>
    %c0_1 = arith.constant 0 : index
    %c0_2 = arith.constant 0 : index
    %1 = vector.load %arg2[%c0_1, %c0_2] : memref<6x1xf32, #tpu.memory_space<vmem>>, vector<6x1xf32>
    %2 = vector.broadcast %1 : vector<6x1xf32> to vector<6x256xf32>
    %3 = arith.mulf %0, %2 : vector<6x256xf32>
    %c0_3 = arith.constant 0 : index
    %c0_4 = arith.constant 0 : index
    %4 = vector.load %arg3[%c0_3, %c0_4] : memref<6x1xf32, #tpu.memory_space<vmem>>, vector<6x1xf32>
    %5 = vector.broadcast %4 : vector<6x1xf32> to vector<6x256xf32>
    %6 = arith.addf %3, %5 : vector<6x256xf32>
    %c0_5 = arith.constant 0 : index
    %c0_6 = arith.constant 0 : index
    %7 = vector.load %arg5[%c0_5, %c0_6] : memref<6x256xf32, #tpu.memory_space<vmem>>, vector<6x256xf32>
    tpu.vector_store %arg5[%c0_5, %c0_6], %6 {strides = array<i32>} : memref<6x256xf32, #tpu.memory_space<vmem>>, vector<6x256xf32>,
    return
  }
  func.func @transform_0(%arg0: i32, %arg1: i32) -> (i32, i32) {
    %c0_i32 = arith.constant 0 : i32
    %c0_i32_0 = arith.constant 0 : i32
    return %arg0, %c0_i32 : i32, i32
  }
  func.func @transform_1(%arg0: i32, %arg1: i32) -> (i32, i32) {
    %c0_i32 = arith.constant 0 : i32
    %c0_i32_0 = arith.constant 0 : i32
    return %arg0, %c0_i32 : i32, i32
  }
  func.func @transform_2(%arg0: i32, %arg1: i32) -> (i32, i32) {
    %c0_i32 = arith.constant 0 : i32
    return %arg0, %arg1 : i32, i32
  }
  func.func @transform_3(%arg0: i32, %arg1: i32) -> (i32, i32) {
    %c0_i32 = arith.constant 0 : i32
    return %arg0, %arg1 : i32, i32
  }
}

</mosaic_0001>

<bundles_post_ra>
// kernel: tpu_custom_call.1
= control target key start
LH: loop header
LB: loop body
LE: loop exit
PB: predicated region body
PF: predicated region fallthrough
CT: control target
= control target key end

     0   :  { %v80_v1 = vmov 0   ;;  %s117_s0 = inlined_call_operand.vmem [shape: f32[6,1], index: 0, kind: input, shape index: {}]   ;;  %s118_s1 = inlined_call_operand.vmem [shape: f32[6,1], index: 1, kind: input, shape index: {}]   ;;  %s119_s2 = inlined_call_operand.vmem [shape: f32[6,256], index: 2, kind: input, shape index: {}]   ;;  %s120_s3 = inlined_call_operand.hbm [shape: f32[6,256], index: 3, kind: output, shape index: {}]  }
   0x1   :  { %v17_v0 = vld [vmem:[%s117_s0] sm:$0x3f]  ;;  %53 = vset.pattern.permute.xlu0 %v80_v1 }
   0x2   :  { %8 = vsyncpa [#allocation3], 0  ;;  %20 = vperm.xlu0 %53, %v17_v0   ;;  %v25_v2 = vld [vmem:[%s118_s1] sm:$0x3f]  ;;  %v16_v5 = vld [vmem:[%s119_s2 + $0x8] sm:$0x3f] }
   0x3   :  { %v15_v4 = vld [vmem:[%s119_s2] sm:$0x3f]  ;;  %s81_s0 = smov [#allocation2]   ;;  %s42_s23 = sshll.u32 %s120_s3, 4  ;;  %s43_s23 = int_to_ptr.hbm [resolvable:$true] %s42_s23 }
   0x4   :  { %s40_s20 = sshll.u32 %s81_s0, 4  ;;  %s41_s20 = int_to_ptr.vmem [resolvable:$true] %s40_s20 }
   0xa   :  { %28 = vperm.xlu0 %53, %v25_v2  }
  0x74   :  { %v21_v3 = vpop.permute.xlu0 %20 }
  0x75   :  { %v23_v6 = vmul.f32 %v21_v3, %v15_v4  ;;  %v24_v7 = vmul.f32 %v21_v3, %v16_v5 }
  0x7c   :  { %v29_v8 = vpop.permute.xlu0 %28 }
  0x7d   :  { %v31_v9 = vadd.f32 %v29_v8, %v23_v6  ;;  %v32_v10 = vadd.f32 %v29_v8, %v24_v7 }
  0x7f   :  { %33 = vst [vmem:[#allocation2] sm:$0x3f] %v31_v9 }
  0x80   :  { %34 = vst [vmem:[#allocation2 + $0x8] sm:$0x3f] %v32_v10 }
  0x81   :  { %45 = dma.vmem_to_hbm [thread:$0]  %s41_s20, 256, %s43_s23, [#allocation3]  }
  0x82   :  { %78 = dma.done.wait [#allocation3], 256  }
  0x83   :  { %79 = vsyncadd [#allocation3], 4294967040 }
  0x84   :  { %50 = vsyncpa [#allocation3], 1 }

</bundles_post_ra>
